<compile_context>
chip_gen: v7x
topology: tpu7x:2x2x1
jax: 0.10.0
libtpu: 0.0.40
codegen_flags: <defaults>
</compile_context>

<pallas_src>
import functools

import jax
import jax.numpy as jnp
from jax.experimental import pallas as pl
from jax.experimental.pallas import tpu as pltpu


def _round_up(x, m):
    return (x + m - 1) // m * m


def _patch_matmul_kernel(a_ref, w_ref, b_ref, o_ref):
    # a_ref: (tm, K)  patch-row tile (bf16 or f32)
    # w_ref: (K, E)   flattened conv weight, constant block across the grid
    # b_ref: (1, E)   bias, f32
    # o_ref: (tm, E)  output tile (bf16 or f32)
    acc = jnp.dot(a_ref[...], w_ref[...], preferred_element_type=jnp.float32)
    o_ref[...] = (acc + b_ref[...]).astype(o_ref.dtype)


def prepare_patch_embed_params(weight, bias, *, use_bf16=True):
    """Hoist the per-call weight reshape/transpose/cast out of the forward path.

    weight: (embed_dim, C, ps, ps)  (PyTorch Conv2d OIHW layout)
    bias:   (embed_dim,)
    returns (w_km, b_row) = ((K, E) matmul weight, (1, E) f32 bias row)
    """
    E = weight.shape[0]
    K = weight.shape[1] * weight.shape[2] * weight.shape[3]
    mm_dtype = jnp.bfloat16 if use_bf16 else weight.dtype
    # Row-major (C, ph, pw) flattening; must match the im2col feature order
    # produced by conv_general_dilated_patches (verified vs the conv ref below).
    w_km = weight.reshape(E, K).T.astype(mm_dtype)      # (K, E)
    b_row = bias.astype(jnp.float32).reshape(1, E)      # (1, E)
    return w_km, b_row


def _choose_tm(M, K, E, tm_req, a_bytes, o_bytes, w_bytes,
               vmem_budget_bytes=24 * 1024 * 1024):
    """Pick the M tile: as large as possible (mem-bound, ~0.35us per grid step)
    while staying inside a VMEM budget that is safe on v7x (64 MiB physical,
    32 MiB scoped limit requested below), not exceeding the problem size, and
    keeping >= 2 grid steps when there is enough work (v7x megacore)."""
    tm = max(128, _round_up(tm_req, 128))
    fixed = 2 * K * E * w_bytes + 2 * E * 4              # weight + bias buffers
    per_row = 2 * (K * a_bytes + E * o_bytes)            # double-buffered A/out
    cap = (vmem_budget_bytes - fixed) // max(per_row, 1)
    tm = min(tm, max(128, cap // 128 * 128))
    tm = min(tm, max(8, _round_up(M, 8)))                # no bigger than needed
    if M > 256:                                          # >= 2 steps if possible
        tm = min(tm, max(128, _round_up(pl.cdiv(M, 2), 128)))
    return tm


def patch_embed_v2(x, w_km, b_row, *, fstride, tstride, patch_size,
                   tm=512, use_bf16=True, out_dtype=None):
    """
    x:     (B, C, F, T) NCHW, like the PyTorch module.
    w_km:  (K, E) prepared weight (prepare_patch_embed_params).
    b_row: (1, E) prepared bias.
    returns (B, num_patches, embed_dim).
    """
    B, C, F, T = x.shape
    ps = patch_size
    K, E = w_km.shape
    assert K == C * ps * ps, (K, C, ps)
    nF = (F - ps) // fstride + 1
    nT = (T - ps) // tstride + 1
    nP = nF * nT
    M = B * nP

    mm_dtype = jnp.bfloat16 if use_bf16 else x.dtype
    if out_dtype is None:
        out_dtype = jnp.bfloat16 if use_bf16 else x.dtype

    # --- patch extraction (XLA-native im2col, pure layout glue) -------------
    # bf16 cast BEFORE extraction; channel-last output so (M, K) is a no-copy
    # reshape (no HBM transpose pass).  Feature order within K is (C, ph, pw).
    patches = jax.lax.conv_general_dilated_patches(
        x.astype(mm_dtype), filter_shape=(ps, ps),
        window_strides=(fstride, tstride), padding="VALID",
        dimension_numbers=("NCHW", "OIHW", "NHWC"))      # (B, nF, nT, K)
    a = patches.reshape(M, K)

    w = w_km.astype(mm_dtype)

    tm = _choose_tm(M, K, E, tm,
                    a_bytes=jnp.dtype(mm_dtype).itemsize,
                    o_bytes=jnp.dtype(out_dtype).itemsize,
                    w_bytes=jnp.dtype(mm_dtype).itemsize)
    grid_m = pl.cdiv(M, tm)       # partial trailing block is masked by Pallas

    out = pl.pallas_call(
        _patch_matmul_kernel,
        out_shape=jax.ShapeDtypeStruct((M, E), out_dtype),
        grid_spec=pltpu.PrefetchScalarGridSpec(
            num_scalar_prefetch=0,
            grid=(grid_m,),
            in_specs=[
                pl.BlockSpec((tm, K), lambda i: (i, 0)),
                pl.BlockSpec((K, E), lambda i: (0, 0)),   # constant block
                pl.BlockSpec((1, E), lambda i: (0, 0)),   # constant block
            ],
            out_specs=pl.BlockSpec((tm, E), lambda i: (i, 0)),
        ),
        compiler_params=pltpu.CompilerParams(
            dimension_semantics=("parallel",),            # megacore-shard M
            vmem_limit_bytes=32 * 1024 * 1024,            # safe on v5e/v6e/v7x
        ),
    )(a, w, b_row)

    # (B, num_patches, embed_dim); no slicing needed (no padding was added).
    return out.reshape(B, nP, E)


if __name__ == "__main__":
    # Small shapes consistent with PatchEmbed_v2's forward:
    #   batch=2, in_chans=2, input_fdim=16, input_tdim=16, embed_dim=32.
    B, C, F, T = 2, 2, 16, 16
    embed_dim = 32

    key = jax.random.PRNGKey(0)
    kx, kw, kb = jax.random.split(key, 3)
    x = jax.random.normal(kx, (B, C, F, T), dtype=jnp.float32)

    def reference(x, weight, bias, fstride, tstride):
        # Pure-JAX f32 reference: conv -> flatten(2) -> transpose(1, 2).
        conv = jax.lax.conv_general_dilated(
            x, weight, window_strides=(fstride, tstride), padding="VALID",
            dimension_numbers=("NCHW", "OIHW", "NCHW"),
        ) + bias.reshape(1, -1, 1, 1)
        Bc, Ec, nFc, nTc = conv.shape
        return conv.reshape(Bc, Ec, nFc * nTc).transpose(0, 2, 1)

    # Two configs: non-overlapping (stride == patch_size, like the module's
    # defaults) and overlapping strides (AST-style).
    for (patch_size, fstride, tstride) in [(4, 4, 4), (4, 2, 2)]:
        weight = jax.random.normal(
            kw, (embed_dim, C, patch_size, patch_size), dtype=jnp.float32) * 0.02
        bias = jax.random.normal(kb, (embed_dim,), dtype=jnp.float32) * 0.02

        nP = ((F - patch_size) // fstride + 1) * ((T - patch_size) // tstride + 1)
        ref = reference(x, weight, bias, fstride, tstride)
        assert ref.shape == (B, nP, embed_dim), ref.shape

        # bf16 fast path (bf16 MXU inputs, bf16 output store).
        w_km, b_row = prepare_patch_embed_params(weight, bias, use_bf16=True)
        fn = jax.jit(functools.partial(
            patch_embed_v2, fstride=fstride, tstride=tstride,
            patch_size=patch_size, use_bf16=True))
        out = jax.block_until_ready(fn(x, w_km, b_row))
        assert out.shape == (B, nP, embed_dim), out.shape
        assert jnp.allclose(out.astype(jnp.float32), ref, atol=2e-2, rtol=2e-2), \
            "bf16 path mismatch vs reference"

        # f32 parity path (kept for numerics testing vs the PyTorch Conv2d).
        w32, b32 = prepare_patch_embed_params(weight, bias, use_bf16=False)
        fn32 = jax.jit(functools.partial(
            patch_embed_v2, fstride=fstride, tstride=tstride,
            patch_size=patch_size, use_bf16=False))
        out32 = jax.block_until_ready(fn32(x, w32, b32))
        assert out32.shape == (B, nP, embed_dim), out32.shape
        assert jnp.allclose(out32, ref, atol=2e-2, rtol=2e-2), \
            "f32 path mismatch vs reference"

    print("KERNEL_OK")
</pallas_src>

<mosaic_0001>
module attributes {stable_mosaic.version = 11 : i64} {
  func.func @_patch_matmul_kernel(%arg0: i32, %arg1: memref<32x32xbf16, #tpu.memory_space<vmem>>, %arg2: memref<32x32xbf16, #tpu.memory_space<vmem>>, %arg3: memref<1x32xf32, #tpu.memory_space<vmem>>, %arg4: memref<32x32xbf16, #tpu.memory_space<vmem>>) attributes {dimension_semantics = [#tpu.dimension_semantics<parallel>], iteration_bounds = array<i64: 1>, scalar_prefetch = 0 : i64, scratch_operands = 0 : i64, tpu.core_type = #tpu.core_type<tc>, window_params = [{transform_indices = @transform_0, window_bounds = array<i64: 32, 32>}, {pipeline_mode = #tpu.pipeline_mode<synchronous>, transform_indices = @transform_1, window_bounds = array<i64: 32, 32>}, {pipeline_mode = #tpu.pipeline_mode<synchronous>, transform_indices = @transform_2, window_bounds = array<i64: 1, 32>}, {transform_indices = @transform_3, window_bounds = array<i64: 32, 32>}]} {
    %c0 = arith.constant 0 : index
    %c0_0 = arith.constant 0 : index
    %0 = vector.load %arg1[%c0, %c0_0] : memref<32x32xbf16, #tpu.memory_space<vmem>>, vector<32x32xbf16>
    %c0_1 = arith.constant 0 : index
    %c0_2 = arith.constant 0 : index
    %1 = vector.load %arg2[%c0_1, %c0_2] : memref<32x32xbf16, #tpu.memory_space<vmem>>, vector<32x32xbf16>
    %cst = arith.constant dense<0.000000e+00> : vector<32x32xf32>
    %2 = tpu.matmul %0, %1, %cst {dimension_numbers = #tpu.dot_dimension_numbers<[1], [0], [0], [1], [0, 0, 1, 1], [], []>} : vector<32x32xbf16>, vector<32x32xbf16>, vector<32x32xf32> -> vector<32x32xf32>
    %c0_3 = arith.constant 0 : index
    %c0_4 = arith.constant 0 : index
    %3 = vector.load %arg3[%c0_3, %c0_4] : memref<1x32xf32, #tpu.memory_space<vmem>>, vector<1x32xf32>
    %4 = vector.broadcast %3 : vector<1x32xf32> to vector<32x32xf32>
    %5 = arith.addf %2, %4 : vector<32x32xf32>
    %6 = arith.truncf %5 : vector<32x32xf32> to vector<32x32xbf16>
    %c0_5 = arith.constant 0 : index
    %c0_6 = arith.constant 0 : index
    %7 = vector.load %arg4[%c0_5, %c0_6] : memref<32x32xbf16, #tpu.memory_space<vmem>>, vector<32x32xbf16>
    tpu.vector_store %arg4[%c0_5, %c0_6], %6 {strides = array<i32>} : memref<32x32xbf16, #tpu.memory_space<vmem>>, vector<32x32xbf16>,
    return
  }
  func.func @transform_0(%arg0: i32) -> (i32, i32) {
    %c0_i32 = arith.constant 0 : i32
    %c0_i32_0 = arith.constant 0 : i32
    return %arg0, %c0_i32 : i32, i32
  }
  func.func @transform_1(%arg0: i32) -> (i32, i32) {
    %c0_i32 = arith.constant 0 : i32
    %c0_i32_0 = arith.constant 0 : i32
    %c0_i32_1 = arith.constant 0 : i32
    return %c0_i32, %c0_i32_0 : i32, i32
  }
  func.func @transform_2(%arg0: i32) -> (i32, i32) {
    %c0_i32 = arith.constant 0 : i32
    %c0_i32_0 = arith.constant 0 : i32
    %c0_i32_1 = arith.constant 0 : i32
    return %c0_i32, %c0_i32_0 : i32, i32
  }
  func.func @transform_3(%arg0: i32) -> (i32, i32) {
    %c0_i32 = arith.constant 0 : i32
    %c0_i32_0 = arith.constant 0 : i32
    return %arg0, %c0_i32 : i32, i32
  }
}

</mosaic_0001>

<bundles_post_ra>
// kernel: patch_embed_v2.1
= control target key start
LH: loop header
LB: loop body
LE: loop exit
PB: predicated region body
PF: predicated region fallthrough
CT: control target
= control target key end

     0   :  { %vm53_vm0 = vcmask 261120   ;;  %s258_s0 = inlined_call_operand.vmem [shape: bf16[32,32], index: 0, kind: input, shape index: {}]   ;;  %s259_s1 = inlined_call_operand.vmem [shape: bf16[32,32], index: 1, kind: input, shape index: {}]   ;;  %s260_s2 = inlined_call_operand.vmem [shape: f32[1,32], index: 2, kind: input, shape index: {}]   ;;  %s261_s3 = inlined_call_operand.hbm [shape: bf16[32,32], index: 3, kind: output, shape index: {}]  }
   0x1   :  { %v176_v0 = vld [vmem:[%s259_s1] sm:$0xff]   ;;  %v177_v1 = vld [vmem:[%s259_s1 + $0x8] sm:$0xff]  }
   0x2   :  { %165 = vmatprep.subr.bf16.mxu0 %v176_v0  ;;  %v178_v2 = vld [vmem:[%s258_s0] sm:$0xff]  }
   0x3   :  { %166 = vmatpush3.bf16.msra.mxu0 %v176_v0  ;;  %169 = vmatprep.mubr.msk.bf16.mxu0 %vm53_vm0, %v178_v2 }
   0x4   :  { %167 = vmatprep.subr.bf16.mxu0 %v177_v1 }
   0x5   :  { %8 = vsyncpa [#allocation3], 0  ;;  %v179_v3 = vld [vmem:[%s258_s0 + $0x8] sm:$0xff]   ;;  %v146_v4 = vld [vmem:[%s260_s2] ss:$0 sm:$0xff]  ;;  %vm125_vm1 = vcmask 257024  }
   0x6   :  { %s204_s1 = smov [#allocation2]  }
   0x7   :  { %168 = vmatpush3.bf16.msra.mxu0 %v177_v1  ;;  %s135_s22 = sshll.u32 %s204_s1, 4  ;;  %s136_s22 = int_to_ptr.vmem [resolvable:$true] %s135_s22 }
   0x8   :  { %s180_s0 = scalar_lea.vmem %s136_s22, 256  ;;  %p185_p1 = scmp.lt.s32.totalorder %s136_s22, %s136_s22 }
   0x9   :  { %p181_p0 = scmp.ne.s32.totalorder %s136_s22, %s180_s0  ;;  %p186_p2 = scmp.lt.s32.totalorder %s180_s0, %s180_s0 }
   0xa   :  { %170 = vmatmul.mubr.msk.bf16.vlgmr.msra.gmra.mrb[0].mxu0 %vm53_vm0, %v179_v3 }
   0xb   :  { %p187_p3 = por %p186_p2, %p185_p1 }
   0xd   :  { %p188_p4 = pnand %p187_p3, %p181_p0 }
  0xdd   :  { %v171_v5 = vpop.f32.mrb[0].mxu0 }
  0xde   :  { %v103_v6 = vadd.f32 %v171_v5, %v146_v4  ;;  %v94_v7 = vpop.f32.mrb[1].mxu0 }
  0xdf   :  { %v95_v8 = vadd.f32 %v146_v4, %v94_v7  ;;  %v172_v9 = vpop.f32.mrb[2].mxu0 }
  0xe0   :  { %v159_v10 = vpack.c.bf16 %v103_v6, %v103_v6  ;;  %v106_v11 = vadd.f32 %v172_v9, %v146_v4  ;;  %v97_v12 = vpop.f32.mrb[3].mxu0 }
  0xe1   :  { %v157_v13 = vpack.c.bf16 %v95_v8, %v95_v8  ;;  %v98_v14 = vadd.f32 %v146_v4, %v97_v12 }
  0xe2   :  { %128 = vst.msk [vmem:[#allocation2 + $0x8] sm:$0xf] %vm125_vm1, %v159_v10  ;;  %v160_v15 = vpack.c.bf16 %v106_v11, %v106_v11 }
  0xe3   :  { %126 = vst.msk [vmem:[#allocation2] sm:$0xf] %vm125_vm1, %v157_v13  ;;  %v158_v16 = vpack.c.bf16 %v98_v14, %v98_v14 }
  0xe4   :  { %129 = vst.msk [vmem:[#allocation2 + $0xc] sm:$0xf] %vm125_vm1, %v160_v15 }
  0xe5   :  { %127 = vst.msk [vmem:[#allocation2 + $0x4] sm:$0xf] %vm125_vm1, %v158_v16 }
  0xe6   :  { %191 = shalt.err (!%p188_p4)
}
  0xe7   :  { %s192_s24 = scalar_lea.hbm %s261_s3, 256 }
  0xe8   :  { %p193_p5 = scmp.ne.s32.totalorder %s261_s3, %s192_s24  ;;  %p196_p6 = scmp.lt.u32.totalorder %s192_s24, %s261_s3 }
  0xea   :  { %p198_p7 = pnand %p196_p6, %p193_p5 }
  0xec   :  { %201 = shalt.err (!%p198_p7)
}
  0xed   :  { %s205_s29 = smov 64   ;;  %s206_s30 = smov 4  }
  0xee   :  { %141 = dma.vmem_to_hbm [thread:$0]  %s136_s22, 256, %s261_s3, [#allocation3], %s205_s29, %s205_s29, %s206_s30  }
  0xef   :  { %202 = dma.done.wait [#allocation3], 256  }
  0xf0   :  { %203 = vsyncadd [#allocation3], 4294967040 }
  0xf1   :  { %145 = vsyncpa [#allocation3], 1 }

</bundles_post_ra>
